<compile_context>
chip_gen: v7x
topology: tpu7x:2x2x1
jax: 0.10.0
libtpu: 0.0.40
codegen_flags: <defaults>
</compile_context>

<pallas_src>
import jax
import jax.numpy as jnp
from jax.experimental import pallas as pl
from jax.experimental.pallas import tpu as pltpu


def _mul2_add_idx_kernel(x_ref, o_ref):
    # Block is (bn, bf) of the flattened (N, F) view.
    bn = x_ref.shape[0]
    # (bn, 1) column of batch indices for this row-block; broadcast in the add.
    idx_i32 = pl.program_id(0) * bn + jax.lax.broadcasted_iota(
        jnp.int32, (bn, 1), 0)

    x = x_ref[...]
    if jnp.issubdtype(o_ref.dtype, jnp.floating):
        out = x.astype(jnp.float32) * 2.0 + idx_i32.astype(jnp.float32)
    else:
        # Compute in int32, cast once: identical wrap behavior (mod 2^k) to
        # doing the arithmetic in the narrow dtype, without wrapping the index
        # itself early.
        out = x.astype(jnp.int32) * 2 + idx_i32
    o_ref[...] = out.astype(o_ref.dtype)


def _pick_block(n_rows, n_cols, itemsize, target_bytes):
    """Choose a lane-dense (bn, bf) block obeying the (8, 128) rule.

    The byte budget accounts for the minimum 8-row sublane granule so the
    realized block never exceeds ~target_bytes.
    """
    if n_cols % 128 == 0 and 8 * n_cols * itemsize > target_bytes:
        # Column tile sized so that an 8-row block stays within budget.
        bf = (target_bytes // (8 * itemsize) // 128) * 128
        bf = max(128, min(bf, n_cols))
    else:
        bf = n_cols  # full array dim -> always legal

    rows = max(1, target_bytes // max(1, bf * itemsize))
    if rows >= n_rows:
        bn = n_rows
    else:
        bn = max(8, (rows // 8) * 8)  # multiple of 8
        if bn >= n_rows:
            bn = n_rows
    return bn, bf


def _ensure_multi_step(n_rows, n_cols, bn, bf):
    """Make sure the grid has >= 2 steps when the shape allows it (megacore)."""
    if pl.cdiv(n_rows, bn) * pl.cdiv(n_cols, bf) >= 2:
        return bn, bf
    if n_rows >= 16:
        bn = max(8, ((n_rows // 2) // 8) * 8)
    elif n_cols >= 256 and n_cols % 128 == 0:
        bf = max(128, ((n_cols // 2) // 128) * 128)
    # else: too small to split legally; a (1,1) grid is fine for tiny inputs.
    return bn, bf


def mul2_add_batch_index(x, *, target_bytes=4 << 20, min_pallas_bytes=1 << 20,
                         force_pallas=False, donate_input=False):
    """Pallas equivalent of PtModule.forward: out[i] = x[i]*2 + i."""
    N = x.shape[0]
    F = 1
    for d in x.shape[1:]:
        F *= d
    itemsize = x.dtype.itemsize

    # Tiny inputs: kernel-launch + per-step overhead dominates; plain XLA wins.
    if (N * F * itemsize < min_pallas_bytes) and not force_pallas:
        idx = jnp.arange(N).reshape((N,) + (1,) * (x.ndim - 1))
        if jnp.issubdtype(x.dtype, jnp.floating):
            out = x.astype(jnp.float32) * 2.0 + idx.astype(jnp.float32)
        else:
            out = x.astype(jnp.int32) * 2 + idx
        return out.astype(x.dtype)

    x_flat = x.reshape(N, F)
    bn, bf = _pick_block(N, F, itemsize, target_bytes)
    bn, bf = _ensure_multi_step(N, F, bn, bf)
    grid = (pl.cdiv(N, bn), pl.cdiv(F, bf))

    # 4 pipeline buffers (in + out, double-buffered) plus headroom; explicit so
    # the same block target works on v5e (16 MiB default) and v6e/v7x.
    block_bytes = bn * bf * itemsize
    vmem_limit = max(16 << 20, 4 * block_bytes + (4 << 20))

    out_flat = pl.pallas_call(
        _mul2_add_idx_kernel,
        out_shape=jax.ShapeDtypeStruct((N, F), x.dtype),
        grid=grid,
        in_specs=[pl.BlockSpec((bn, bf), lambda i, j: (i, j))],
        out_specs=pl.BlockSpec((bn, bf), lambda i, j: (i, j)),
        compiler_params=pltpu.CompilerParams(
            dimension_semantics=("parallel", "parallel"),
            vmem_limit_bytes=int(vmem_limit),
        ),
        input_output_aliases=({0: 0} if donate_input else {}),
    )(x_flat)

    return out_flat.reshape(x.shape)


if __name__ == "__main__":
    key = jax.random.PRNGKey(0)
    x = jax.random.normal(key, (2, 4, 16, 16), dtype=jnp.float32)
    ref = x * 2 + jnp.arange(x.shape[0], dtype=x.dtype)[:, None, None, None]

    # 1) Exercise the Pallas kernel on the small demo shape (forced past the
    #    tiny-input short-circuit).
    out = jax.block_until_ready(mul2_add_batch_index(x, force_pallas=True))
    assert out.shape == x.shape and out.dtype == x.dtype
    assert jnp.allclose(out, ref, atol=1e-6), "Pallas path mismatch vs reference"

    # 2) Default path (short-circuits to plain XLA at this size).
    out2 = jax.block_until_ready(mul2_add_batch_index(x))
    assert jnp.allclose(out2, ref, atol=1e-6), "XLA fallback mismatch vs reference"

    # 3) A modestly larger input that exercises the multi-step / split grid.
    y = jax.random.normal(jax.random.PRNGKey(1), (16, 8, 16, 128),
                          dtype=jnp.float32)
    refy = y * 2 + jnp.arange(y.shape[0], dtype=y.dtype)[:, None, None, None]
    outy = jax.block_until_ready(mul2_add_batch_index(y))
    assert jnp.allclose(outy, refy, atol=1e-5), "tiled path mismatch vs reference"

    print("KERNEL_OK")
</pallas_src>

<mosaic_0001>
module attributes {stable_mosaic.version = 11 : i64} {
  func.func @_mul2_add_idx_kernel(%arg0: i32, %arg1: i32, %arg2: memref<2x512xf32, #tpu.memory_space<vmem>>, %arg3: memref<2x512xf32, #tpu.memory_space<vmem>>) attributes {dimension_semantics = [#tpu.dimension_semantics<parallel>, #tpu.dimension_semantics<parallel>], iteration_bounds = array<i64: 1, 2>, scalar_prefetch = 0 : i64, scratch_operands = 0 : i64, tpu.core_type = #tpu.core_type<tc>, window_params = [{transform_indices = @transform_0, window_bounds = array<i64: 2, 512>}, {transform_indices = @transform_1, window_bounds = array<i64: 2, 512>}]} {
    %c2_i32 = arith.constant 2 : i32
    %0 = arith.muli %arg0, %c2_i32 : i32
    %1 = tpu.iota {dimensions = array<i32: 0>} : vector<2x1xi32>
    %2 = vector.broadcast %0 : i32 to vector<2x1xi32>
    %3 = arith.addi %2, %1 : vector<2x1xi32>
    %c0 = arith.constant 0 : index
    %c0_0 = arith.constant 0 : index
    %4 = vector.load %arg2[%c0, %c0_0] : memref<2x512xf32, #tpu.memory_space<vmem>>, vector<2x512xf32>
    %cst = arith.constant 2.000000e+00 : f32
    %5 = vector.broadcast %cst : f32 to vector<2x512xf32>
    %6 = arith.mulf %4, %5 : vector<2x512xf32>
    %7 = arith.sitofp %3 : vector<2x1xi32> to vector<2x1xf32>
    %8 = vector.broadcast %7 : vector<2x1xf32> to vector<2x512xf32>
    %9 = arith.addf %6, %8 : vector<2x512xf32>
    %c0_1 = arith.constant 0 : index
    %c0_2 = arith.constant 0 : index
    %10 = vector.load %arg3[%c0_1, %c0_2] : memref<2x512xf32, #tpu.memory_space<vmem>>, vector<2x512xf32>
    tpu.vector_store %arg3[%c0_1, %c0_2], %9 {strides = array<i32>} : memref<2x512xf32, #tpu.memory_space<vmem>>, vector<2x512xf32>,
    return
  }
  func.func @transform_0(%arg0: i32, %arg1: i32) -> (i32, i32) {
    %c0_i32 = arith.constant 0 : i32
    return %arg0, %arg1 : i32, i32
  }
  func.func @transform_1(%arg0: i32, %arg1: i32) -> (i32, i32) {
    %c0_i32 = arith.constant 0 : i32
    return %arg0, %arg1 : i32, i32
  }
}

</mosaic_0001>

<bundles_post_ra>
// kernel: tpu_custom_call.1
= control target key start
LH: loop header
LB: loop body
LE: loop exit
PB: predicated region body
PF: predicated region fallthrough
CT: control target
= control target key end

     0   :  { %6 = vsyncpa [#allocation3], 0  ;;  %s652_s0 = inlined_call_operand.hbm [shape: f32[2,1024], index: 0, kind: input, shape index: {}]   ;;  %s653_s1 = inlined_call_operand.hbm [shape: f32[2,1024], index: 1, kind: output, shape index: {}]  }
   0x1   :  { %8 = vsyncpa [#allocation3 + $0x1], 0 }
   0x2   :  { %9 = vsyncpa [#allocation4], 0 }
   0x3   :  { %11 = vsyncpa [#allocation4 + $0x1], 0  ;;  %s480_s6 = smov 0   ;;  %s482_s7 = smov 0  }
   0x4   :  { %s484_s8 = smov 0   ;;  %s486_s9 = smov 0  }
   0x5   :  { %s488_s10 = smov 0   ;;  %s490_s11 = smov 0  }
   0x6 LB: > { %s273_s12 = sadd.s32 4294967295, %s465_s11   ;;  %s274_s13 = sadd.s32 4294967294, %s465_s11   ;;  %s465_s11 = sphi %s490_s11, %s17_s11   ;;  %s461_s10 = sphi %s488_s10, %s669_s10   ;;  %s457_s9 = sphi %s486_s9, %s668_s9   ;;  %s453_s8 = sphi %s484_s8, %s667_s8   ;;  %s449_s7 = sphi %s482_s7, %s666_s7   ;;  %s445_s6 = sphi %s480_s6, %s665_s6  }
   0x7   : > { %s26_s14 = sadd.s32 1, %s461_s10  ;;  %s38_s15 = sadd.s32 1, %s453_s8 }
   0x8   : > { %p27_p0 = scmp.ge.s32.totalorder %s26_s14, 2  ;;  %p45_p1 = scmp.ne.s32.totalorder %s453_s8, %s449_s7 }
   0x9   : > { %p46_p2 = scmp.eq.s32.totalorder %s465_s11, 0  ;;  %p51_p3 = scmp.ne.s32.totalorder %s449_s7, %s445_s6 }
   0xa   : > { %s671_s14 = smov (%p27_p0, %s26_s14), 0  ;;  %p52_p5 = scmp.eq.s32.totalorder %s273_s12, 0 }
   0xb   : > { %p521_p4 = por %p46_p2, %p45_p1  ;;  %s34_s17 = ssub.s32 %s461_s10, %s671_s14 }
   0xc   : > { %p77_p6 = scmp.eq.s32.totalorder %s273_s12, 1  ;;  %p36_p7 = scmp.eq.s32.totalorder %s34_s17, 0 }
   0xd   : > { %p527_p8 = por %p52_p5, %p51_p3  ;;  %p83_p10 = scmp.eq.s32.totalorder %s274_s13, 1 }
   0xe   : > { %p531_p9 = por %p77_p6, %p45_p1  ;;  %p302_p13 = scmp.lt.s32.totalorder %s465_s11, 2 }
   0xf   : > { %s536_s20 = scalar_select %p36_p7, %s453_s8, %s38_s15  }
  0x10   : > { %s657_s19 = scalar_select %p531_p9, 1, 0 }
  0x11   : > { %p538_p11 = por %p83_p10, %p51_p3  ;;  %s103_s22 = sand.u32 1, %s453_s8  }
  0x12   : > { %s277_s23 = sshll.u32 %s103_s22, 3  ;;  %s288_s24 = sshll.u32 %s461_s10, 7 }
  0x13   : > { %s658_s21 = scalar_select %p538_p11, 1, 0 }
  0x14   : > { %s549_s27 = scalar_lea.hbm %s652_s0, %s288_s24  ;;  %s107_s28 = scalar_lea.vmem [#allocation2], %s277_s23 }
  0x15   : > { %s117_s29 = sshll.u32 %s107_s28, 4  ;;  %p555_p0 = pnand %p302_p13, %p521_p4  ;;  %s551_s29 = int_to_ptr.vmem [resolvable:$true] %s117_s29 }
  0x16   : > { %s104_s2 = scalar_lea.sflag [#allocation3], %s103_s22  ;;  %s353_s3 = scalar_lea.hbm %s549_s27, 128 }
  0x17   : > { %p354_p3 = scmp.ne.s32.totalorder %s549_s27, %s353_s3  ;;  %p355_p5 = pneg %p555_p0 }
  0x18   : > { %s358_s12 = scalar_lea.hbm %s652_s0, 256  ;;  %p359_p4 = scmp.lt.u32.totalorder %s549_s27, %s652_s0 }
  0x19   : > { %p356_p6 = pnand %p355_p5, %p354_p3  ;;  %p360_p10 = scmp.lt.u32.totalorder %s358_s12, %s353_s3 }
  0x1a   : > { %p362_p12 = scmp.lt.u32.totalorder %s353_s3, %s549_s27 }
  0x1b   : > { %p357_p7 = pneg %p356_p6  ;;  %p361_p13 = por %p360_p10, %p359_p4 }
  0x1d   : > { %p363_p1 = por %p362_p12, %p361_p13 }
  0x1f   : > { %p364_p2 = pnand %p363_p1, %p357_p7 }
  0x21   : > { %367 = shalt.err (!%p364_p2)
}
  0x22   : > { %s368_s16 = scalar_lea.vmem %s551_s29, 128  ;;  %s467_s17 = smov [#allocation2]  }
  0x23   : > { %p369_p3 = scmp.ne.s32.totalorder %s551_s29, %s368_s16  ;;  %s373_s22 = sshll.u32 %s467_s17, 4  ;;  %s374_s22 = int_to_ptr.vmem [resolvable:$false] %s373_s22 }
  0x24   : > { %s375_s23 = scalar_lea.vmem %s374_s22, 256  ;;  %p376_p9 = scmp.lt.s32.totalorder %s551_s29, %s374_s22 }
  0x25   : > { %p371_p6 = pnand %p369_p3, %p355_p5  ;;  %p377_p4 = scmp.lt.s32.totalorder %s375_s23, %s368_s16 }
  0x27   : > { %p372_p11 = pneg %p371_p6  ;;  %p378_p10 = por %p377_p4, %p376_p9 }
  0x29   : > { %p379_p12 = pnand %p378_p10, %p372_p11 }
  0x2b   : > { %382 = shalt.err (!%p379_p12)
}
  0x2c   : > { %297 = dma.hbm_to_vmem [thread:$0]  (!%p555_p0), %s549_s27, 128, %s551_s29, %s104_s2  }
  0x2d   : > { %p660_p1 = scmp.lt.s32.totalorder %s465_s11, 3  ;;  %p661_p2 = scmp.ge.s32.totalorder %s465_s11, 1 }
  0x2f   : > { %p123_p5 = pnand %p661_p2, %p660_p1 }
  0x30   : > { %s591_s24 = sand.u32 (!%p123_p5), 1, %s449_s7  }
  0x31   : > { %126 = sbr.rel (%p123_p5) target bundleno = 83 (0x53), region = 24  ;;  %s281_s25 = sshll.u32 (!%p123_p5), %s591_s24, 3 }
  0x32   : > { %s129_s26 = scalar_lea.sflag (!%p123_p5), [#allocation3], %s591_s24  ;;  %s132_s28 = scalar_lea.vmem (!%p123_p5), [#allocation2], %s281_s25 }
  0x38   : > { %436 = dma.done.wait (%p527_p8), %s129_s26, 128  }
  0x39   : > { %438 = vsyncadd (%p527_p8), %s129_s26, 4294967168  ;;  %v154_v0 = vlaneseq  ;;  %v468_v1 = vmov 269488144   ;;  %v158_v7 = vld [vmem:[%s132_s28] sm:$0xff]  ;;  %s150_s27 = scalar_lea.vmem [#allocation5], %s281_s25  ;;  %s289_s30 = sshll.u32 %s457_s9, 7 }
  0x3a   : > { %v163_v2 = vunpack.c.l.s4 %v468_v1  ;;  %s189_s29 = sshll.u32 %s150_s27, 4  ;;  %v159_v9 = vmul.f32 2.0, %v158_v7  ;;  %s605_s3 = scalar_lea.hbm %s653_s1, %s289_s30  ;;  %s600_s29 = int_to_ptr.vmem [resolvable:$true] %s189_s29 }
  0x3b   : > { %v155_v3 = vshrl.u32 %v154_v0, 7  ;;  %s173_s4 = scalar_lea.sflag [#allocation4], %s591_s24  ;;  %s383_s5 = scalar_lea.vmem %s600_s29, 128 }
  0x3c   : > { %v164_v4 = vunpack.c.0.s8 %v163_v2  ;;  %p384_p8 = scmp.ne.s32.totalorder %s600_s29, %s383_s5  ;;  %p662_p9 = scmp.ne.s32.totalorder %s657_s19, 0 }
  0x3d   : > { %v160_v5 = vcvt.s32.f32 %v155_v3  ;;  %s469_s9 = smov [#allocation5]  }
  0x3e   : > { %v167_v6 = vsub.s32 %v164_v4, %v155_v3  ;;  %p385_p11 = pnand %p384_p8, %p662_p9  ;;  %s387_s12 = sshll.u32 %s469_s9, 4  ;;  %s388_s12 = int_to_ptr.vmem [resolvable:$false] %s387_s12 }
  0x3f   : > { %s389_s13 = scalar_lea.vmem %s388_s12, 256  ;;  %p390_p7 = scmp.lt.s32.totalorder %s600_s29, %s388_s12 }
  0x40   : > { %v168_v8 = vrot.slane %v160_v5, %v167_v6  ;;  %p386_p0 = pneg %p385_p11  ;;  %p391_p13 = scmp.lt.s32.totalorder %s389_s13, %s383_s5 }
  0x42   : > { %v170_v10 = vadd.f32 %v168_v8, %v159_v9  ;;  %p392_p3 = por %p391_p13, %p390_p7 }
  0x44   : > { %171 = vst [vmem:[%s150_s27] sm:$0xff] %v170_v10  ;;  %p393_p6 = pnand %p392_p3, %p386_p0 }
  0x46   : > { %396 = shalt.err (!%p393_p6)
}
  0x47   : > { %s397_s15 = scalar_lea.hbm %s605_s3, 128  ;;  %s401_s22 = scalar_lea.hbm %s653_s1, 256 }
  0x48   : > { %p398_p4 = scmp.ne.s32.totalorder %s605_s3, %s397_s15  ;;  %p402_p1 = scmp.lt.u32.totalorder %s605_s3, %s653_s1 }
  0x49   : > { %p403_p2 = scmp.lt.u32.totalorder %s401_s22, %s397_s15  ;;  %p405_p8 = scmp.lt.u32.totalorder %s397_s15, %s605_s3 }
  0x4a   : > { %p399_p10 = pnand %p398_p4, %p662_p9 }
  0x4b   : > { %p404_p5 = por %p403_p2, %p402_p1 }
  0x4c   : > { %p400_p12 = pneg %p399_p10 }
  0x4d   : > { %p406_p11 = por %p405_p8, %p404_p5 }
  0x4f   : > { %p407_p0 = pnand %p406_p11, %p400_p12 }
  0x51   : > { %410 = shalt.err (!%p407_p0)
}
  0x52   : > { %292 = dma.vmem_to_hbm [thread:$0]  (%p662_p9), %s600_s29, 128, %s605_s3, %s173_s4  }
  0x53 PF: > { %s201_s25 = sand.u32 1, %s445_s6   ;;  %p663_p7 = scmp.ne.s32.totalorder %s658_s21, 0 }
  0x54   : > { %p664_p13 = scmp.ge.s32.totalorder %s465_s11, 2  ;;  %s202_s26 = scalar_lea.sflag [#allocation4], %s201_s25 }
  0x56   : > { %p299_p3 = pnand %p664_p13, %p663_p7 }
  0x58   : > { %440 = dma.done.wait (!%p299_p3), %s202_s26, 128  }
  0x59   : > { %442 = vsyncadd (!%p299_p3), %s202_s26, 4294967168  ;;  %s17_s11 = sadd.s32 1, %s465_s11   ;;  %s665_s6 = smov %s449_s7 }
  0x5a   : > { %p14_p6 = scmp.ge.s32.totalorder %s17_s11, 4   ;;  %s666_s7 = smov %s453_s8 }
  0x5b   : > { %s667_s8 = smov %s536_s20  ;;  %s668_s9 = smov %s461_s10 }
  0x5c   : > { %s669_s10 = smov %s671_s14  ;;  %16 = sbr.rel (!%p14_p6) target bundleno = 6 (0x6), region = 69 }
  0x63   :  { %207 = vsyncpa [#allocation3], 1 }
  0x64   :  { %209 = vsyncpa [#allocation3 + $0x1], 1 }
  0x65   :  { %210 = vsyncpa [#allocation4], 1 }
  0x66   :  { %212 = vsyncpa [#allocation4 + $0x1], 1 }

</bundles_post_ra>
